<compile_context>
chip_gen: v5e
topology: v5e:2x2
jax: 0.10.0
libtpu: 0.0.40
codegen_flags: <defaults>
</compile_context>

<pallas_src>
import functools

import jax
import jax.numpy as jnp
from jax.experimental import pallas as pl
from jax.experimental.pallas import tpu as pltpu


HIDDEN = 128


def _round_up(x, m):
    return (x + m - 1) // m * m


def _agent_mlp_kernel(x_ref, w_ref, b_ref, q_ref, a_ref, *, s_pad, hidden, action_size):
    # x_ref : (TB, s_pad)      f32  (zero-padded features)
    # w_ref : (s_pad+2H, H)    bf16 (w1 | w2 | w3, all zero-padded to the slab)
    # b_ref : (8, H)           f32  (row0=b1, row1=b2, row2=b3-padded)
    # q_ref : (TB, H)          f32  (lane-dense Q, cols >= action_size are junk/zero)
    # a_ref : (TB, 1)          i32  (greedy action)
    x = x_ref[...].astype(jnp.bfloat16)

    # Static, sublane-aligned views into the packed weight slab (no copies).
    w1 = w_ref[0:s_pad, :]
    w2 = w_ref[s_pad:s_pad + hidden, :]
    w3 = w_ref[s_pad + hidden:s_pad + 2 * hidden, :]
    b1 = b_ref[0:1, :]
    b2 = b_ref[1:2, :]
    b3 = b_ref[2:3, :]

    h1 = jnp.dot(x, w1, preferred_element_type=jnp.float32) + b1          # (TB, H) f32
    h1 = jnp.maximum(h1, 0.0)
    h2 = jnp.dot(h1.astype(jnp.bfloat16), w2,
                 preferred_element_type=jnp.float32) + b2                  # (TB, H) f32
    h2 = jnp.maximum(h2, 0.0)
    q = jnp.dot(h2.astype(jnp.bfloat16), w3,
                preferred_element_type=jnp.float32) + b3                   # (TB, H) f32

    q_ref[...] = q  # lane-dense (128-wide) store

    # Fused greedy action: masked max + first-index-of-max (only VPU/XLU ops).
    col = jax.lax.broadcasted_iota(jnp.int32, q.shape, 1)
    qm = jnp.where(col < action_size, q, -jnp.inf)
    qmax = jnp.max(qm, axis=1, keepdims=True)
    idx = jnp.where(qm == qmax, col, hidden)
    a_ref[...] = jnp.min(idx, axis=1, keepdims=True).astype(jnp.int32)


def pack_params(params, state_size, action_size, hidden=HIDDEN):
    """Pack (w1,b1,w2,b2,w3,b3) into one bf16 weight slab + one f32 bias slab."""
    w1, b1, w2, b2, w3, b3 = params  # w: (in, out); b: (out,)
    s_pad = _round_up(state_size, 8)
    a_pad = _round_up(action_size, 128)
    assert hidden == 128 and a_pad == hidden, "packing assumes hidden=128, action_size<=128"

    w1p = jnp.zeros((s_pad, hidden), jnp.float32).at[:state_size, :].set(w1)
    w3p = jnp.zeros((hidden, hidden), jnp.float32).at[:, :action_size].set(w3)
    w_slab = jnp.concatenate([w1p, w2, w3p], axis=0).astype(jnp.bfloat16)  # (s_pad+2H, H)

    b_slab = jnp.zeros((8, hidden), jnp.float32)
    b_slab = b_slab.at[0, :].set(b1)
    b_slab = b_slab.at[1, :].set(b2)
    b_slab = b_slab.at[2, :action_size].set(b3)
    return w_slab, b_slab


def agent_forward(obs, w_slab, b_slab, *, state_size, action_size,
                  hidden=HIDDEN, batch_tile=256):
    """obs: (B, state_size) f32 -> (Q: (B, action_size) f32, action: (B,) int32)."""
    B = obs.shape[0]
    s_pad = _round_up(state_size, 8)

    tb = min(batch_tile, _round_up(B, 8))           # batch tile (multiple of 8)
    b_pad = _round_up(B, tb)

    # Zero-pad obs to (B_pad, s_pad); zero padding is mathematically inert.
    x = jnp.zeros((b_pad, s_pad), jnp.float32).at[:B, :state_size].set(
        obs.astype(jnp.float32))

    kernel = functools.partial(_agent_mlp_kernel, s_pad=s_pad, hidden=hidden,
                               action_size=action_size)

    q_pad, act_pad = pl.pallas_call(
        kernel,
        out_shape=(jax.ShapeDtypeStruct((b_pad, hidden), jnp.float32),
                   jax.ShapeDtypeStruct((b_pad, 1), jnp.int32)),
        grid=(b_pad // tb,),
        in_specs=[
            pl.BlockSpec((tb, s_pad), lambda i: (i, 0)),          # activations: tiled
            pl.BlockSpec(w_slab.shape, lambda i: (0, 0)),         # weights: VMEM-resident
            pl.BlockSpec(b_slab.shape, lambda i: (0, 0)),         # biases:  VMEM-resident
        ],
        out_specs=(
            pl.BlockSpec((tb, hidden), lambda i: (i, 0)),         # lane-dense Q
            pl.BlockSpec((tb, 1), lambda i: (i, 0)),              # greedy action
        ),
        compiler_params=pltpu.CompilerParams(
            dimension_semantics=("parallel",)),                   # megacore on v7x
    )(x, w_slab, b_slab)

    return q_pad[:B, :action_size], act_pad[:B, 0]


def init_params(key, state_size=4, hidden=HIDDEN, action_size=5):
    """Deterministic synthetic parameters matching the nn.Linear layers."""
    k1, k2, k3, k4, k5, k6 = jax.random.split(key, 6)

    def u(k, shape, fan_in):
        bound = 1.0 / jnp.sqrt(jnp.float32(fan_in))
        return jax.random.uniform(k, shape, jnp.float32, -bound, bound)

    w1 = u(k1, (state_size, hidden), state_size)   # stored (in, out) == W.T of PyTorch
    b1 = u(k2, (hidden,), state_size)
    w2 = u(k3, (hidden, hidden), hidden)
    b2 = u(k4, (hidden,), hidden)
    w3 = u(k5, (hidden, action_size), hidden)
    b3 = u(k6, (action_size,), hidden)
    return (w1, b1, w2, b2, w3, b3)


def reference_forward(obs, params):
    """Pure-JAX reference with the same bf16-weight / f32-accumulate numerics."""
    w1, b1, w2, b2, w3, b3 = params
    x = obs.astype(jnp.bfloat16)
    h1 = jnp.maximum(jnp.dot(x, w1.astype(jnp.bfloat16),
                             preferred_element_type=jnp.float32) + b1, 0.0)
    h2 = jnp.maximum(jnp.dot(h1.astype(jnp.bfloat16), w2.astype(jnp.bfloat16),
                             preferred_element_type=jnp.float32) + b2, 0.0)
    return jnp.dot(h2.astype(jnp.bfloat16), w3.astype(jnp.bfloat16),
                   preferred_element_type=jnp.float32) + b3


if __name__ == "__main__":
    key = jax.random.PRNGKey(0)
    pkey, xkey = jax.random.split(key)

    state_size, action_size, hidden, batch = 4, 5, HIDDEN, 8
    params = init_params(pkey, state_size=state_size, hidden=hidden,
                         action_size=action_size)
    w_slab, b_slab = pack_params(params, state_size, action_size, hidden)

    obs = jax.random.normal(xkey, (batch, state_size), dtype=jnp.float32)

    q, act = agent_forward(obs, w_slab, b_slab,
                           state_size=state_size, action_size=action_size)
    q, act = jax.block_until_ready((q, act))

    q_ref = reference_forward(obs, params)
    assert q.shape == (batch, action_size)
    assert act.shape == (batch,)
    assert jnp.allclose(q, q_ref, atol=2e-2, rtol=2e-2), "Q mismatch vs JAX reference"
    assert bool(jnp.all(act == jnp.argmax(q, axis=1))), "fused argmax mismatch"

    print("KERNEL_OK")
</pallas_src>

<mosaic_0001>
module attributes {stable_mosaic.version = 11 : i64} {
  func.func @_agent_mlp_kernel(%arg0: i32, %arg1: memref<8x8xf32, #tpu.memory_space<vmem>>, %arg2: memref<264x128xbf16, #tpu.memory_space<vmem>>, %arg3: memref<8x128xf32, #tpu.memory_space<vmem>>, %arg4: memref<8x128xf32, #tpu.memory_space<vmem>>, %arg5: memref<8x1xi32, #tpu.memory_space<vmem>>) attributes {dimension_semantics = [#tpu.dimension_semantics<parallel>], iteration_bounds = array<i64: 1>, scalar_prefetch = 0 : i64, scratch_operands = 0 : i64, tpu.core_type = #tpu.core_type<tc>, window_params = [{transform_indices = @transform_0, window_bounds = array<i64: 8, 8>}, {pipeline_mode = #tpu.pipeline_mode<synchronous>, transform_indices = @transform_1, window_bounds = array<i64: 264, 128>}, {pipeline_mode = #tpu.pipeline_mode<synchronous>, transform_indices = @transform_2, window_bounds = array<i64: 8, 128>}, {transform_indices = @transform_3, window_bounds = array<i64: 8, 128>}, {transform_indices = @transform_4, window_bounds = array<i64: 8, 1>}]} {
    %c0 = arith.constant 0 : index
    %c0_0 = arith.constant 0 : index
    %0 = vector.load %arg1[%c0, %c0_0] : memref<8x8xf32, #tpu.memory_space<vmem>>, vector<8x8xf32>
    %1 = arith.truncf %0 : vector<8x8xf32> to vector<8x8xbf16>
    %c0_1 = arith.constant 0 : index
    %c0_2 = arith.constant 0 : index
    %2 = vector.load %arg2[%c0_1, %c0_2] : memref<264x128xbf16, #tpu.memory_space<vmem>>, vector<8x128xbf16>
    %c8 = arith.constant 8 : index
    %c0_3 = arith.constant 0 : index
    %3 = vector.load %arg2[%c8, %c0_3] : memref<264x128xbf16, #tpu.memory_space<vmem>>, vector<128x128xbf16>
    %c136 = arith.constant 136 : index
    %c0_4 = arith.constant 0 : index
    %4 = vector.load %arg2[%c136, %c0_4] : memref<264x128xbf16, #tpu.memory_space<vmem>>, vector<128x128xbf16>
    %c0_5 = arith.constant 0 : index
    %c0_6 = arith.constant 0 : index
    %5 = vector.load %arg3[%c0_5, %c0_6] : memref<8x128xf32, #tpu.memory_space<vmem>>, vector<1x128xf32>
    %c1 = arith.constant 1 : index
    %c0_7 = arith.constant 0 : index
    %6 = vector.load %arg3[%c1, %c0_7] : memref<8x128xf32, #tpu.memory_space<vmem>>, vector<1x128xf32>
    %c2 = arith.constant 2 : index
    %c0_8 = arith.constant 0 : index
    %7 = vector.load %arg3[%c2, %c0_8] : memref<8x128xf32, #tpu.memory_space<vmem>>, vector<1x128xf32>
    %cst = arith.constant dense<0.000000e+00> : vector<8x128xf32>
    %8 = tpu.matmul %1, %2, %cst {dimension_numbers = #tpu.dot_dimension_numbers<[1], [0], [0], [1], [0, 0, 1, 1], [], []>} : vector<8x8xbf16>, vector<8x128xbf16>, vector<8x128xf32> -> vector<8x128xf32>
    %9 = vector.broadcast %5 : vector<1x128xf32> to vector<8x128xf32>
    %10 = arith.addf %8, %9 : vector<8x128xf32>
    %cst_9 = arith.constant 0.000000e+00 : f32
    %11 = vector.broadcast %cst_9 : f32 to vector<8x128xf32>
    %12 = arith.maximumf %10, %11 : vector<8x128xf32>
    %13 = arith.truncf %12 : vector<8x128xf32> to vector<8x128xbf16>
    %cst_10 = arith.constant dense<0.000000e+00> : vector<8x128xf32>
    %14 = tpu.matmul %13, %3, %cst_10 {dimension_numbers = #tpu.dot_dimension_numbers<[1], [0], [0], [1], [0, 0, 1, 1], [], []>} : vector<8x128xbf16>, vector<128x128xbf16>, vector<8x128xf32> -> vector<8x128xf32>
    %15 = vector.broadcast %6 : vector<1x128xf32> to vector<8x128xf32>
    %16 = arith.addf %14, %15 : vector<8x128xf32>
    %cst_11 = arith.constant 0.000000e+00 : f32
    %17 = vector.broadcast %cst_11 : f32 to vector<8x128xf32>
    %18 = arith.maximumf %16, %17 : vector<8x128xf32>
    %19 = arith.truncf %18 : vector<8x128xf32> to vector<8x128xbf16>
    %cst_12 = arith.constant dense<0.000000e+00> : vector<8x128xf32>
    %20 = tpu.matmul %19, %4, %cst_12 {dimension_numbers = #tpu.dot_dimension_numbers<[1], [0], [0], [1], [0, 0, 1, 1], [], []>} : vector<8x128xbf16>, vector<128x128xbf16>, vector<8x128xf32> -> vector<8x128xf32>
    %21 = vector.broadcast %7 : vector<1x128xf32> to vector<8x128xf32>
    %22 = arith.addf %20, %21 : vector<8x128xf32>
    %c0_13 = arith.constant 0 : index
    %c0_14 = arith.constant 0 : index
    %23 = vector.load %arg4[%c0_13, %c0_14] : memref<8x128xf32, #tpu.memory_space<vmem>>, vector<8x128xf32>
    tpu.vector_store %arg4[%c0_13, %c0_14], %22 {strides = array<i32>} : memref<8x128xf32, #tpu.memory_space<vmem>>, vector<8x128xf32>,
    %24 = tpu.iota {dimensions = array<i32: 1>} : vector<8x128xi32>
    %c5_i32 = arith.constant 5 : i32
    %25 = vector.broadcast %c5_i32 : i32 to vector<8x128xi32>
    %26 = arith.cmpi slt, %24, %25 : vector<8x128xi32>
    %cst_15 = arith.constant 0xFF800000 : f32
    %27 = vector.broadcast %cst_15 : f32 to vector<8x128xf32>
    %28 = arith.select %26, %22, %27 : vector<8x128xi1>, vector<8x128xf32>
    %cst_16 = arith.constant dense<0xFF800000> : vector<8xf32>
    %29 = vector.multi_reduction <maximumf>, %28, %cst_16 [1] : vector<8x128xf32> to vector<8xf32>
    %30 = vector.shape_cast %29 : vector<8xf32> to vector<8x1xf32>
    %31 = vector.broadcast %30 : vector<8x1xf32> to vector<8x128xf32>
    %32 = arith.cmpf oeq, %28, %31 : vector<8x128xf32>
    %c128_i32 = arith.constant 128 : i32
    %33 = vector.broadcast %c128_i32 : i32 to vector<8x128xi32>
    %34 = arith.select %32, %24, %33 : vector<8x128xi1>, vector<8x128xi32>
    %cst_17 = arith.constant dense<2147483647> : vector<8xi32>
    %35 = vector.multi_reduction <minsi>, %34, %cst_17 [1] : vector<8x128xi32> to vector<8xi32>
    %36 = vector.shape_cast %35 : vector<8xi32> to vector<8x1xi32>
    %c0_18 = arith.constant 0 : index
    %c0_19 = arith.constant 0 : index
    %37 = vector.load %arg5[%c0_18, %c0_19] : memref<8x1xi32, #tpu.memory_space<vmem>>, vector<8x1xi32>
    tpu.vector_store %arg5[%c0_18, %c0_19], %36 {strides = array<i32>} : memref<8x1xi32, #tpu.memory_space<vmem>>, vector<8x1xi32>,
    return
  }
  func.func @transform_0(%arg0: i32) -> (i32, i32) {
    %c0_i32 = arith.constant 0 : i32
    %c0_i32_0 = arith.constant 0 : i32
    return %arg0, %c0_i32 : i32, i32
  }
  func.func @transform_1(%arg0: i32) -> (i32, i32) {
    %c0_i32 = arith.constant 0 : i32
    %c0_i32_0 = arith.constant 0 : i32
    %c0_i32_1 = arith.constant 0 : i32
    return %c0_i32, %c0_i32_0 : i32, i32
  }
  func.func @transform_2(%arg0: i32) -> (i32, i32) {
    %c0_i32 = arith.constant 0 : i32
    %c0_i32_0 = arith.constant 0 : i32
    %c0_i32_1 = arith.constant 0 : i32
    return %c0_i32, %c0_i32_0 : i32, i32
  }
  func.func @transform_3(%arg0: i32) -> (i32, i32) {
    %c0_i32 = arith.constant 0 : i32
    %c0_i32_0 = arith.constant 0 : i32
    return %arg0, %c0_i32 : i32, i32
  }
  func.func @transform_4(%arg0: i32) -> (i32, i32) {
    %c0_i32 = arith.constant 0 : i32
    %c0_i32_0 = arith.constant 0 : i32
    return %arg0, %c0_i32 : i32, i32
  }
}

</mosaic_0001>

<bundles_post_ra>
// kernel: tpu_custom_call.1
= control target key start
LH: loop header
LB: loop body
LE: loop exit
PB: predicated region body
PF: predicated region fallthrough
CT: control target
= control target key end

     0   :  { %10 = vsyncpa [#allocation3], 0  ;;  %s534_s0 = inlined_call_operand.hbm [shape: f32[8,8], index: 0, kind: input, shape index: {}]   ;;  %s535_s1 = inlined_call_operand.hbm [shape: bf16[264,128], index: 1, kind: input, shape index: {}]   ;;  %s536_s2 = inlined_call_operand.hbm [shape: f32[8,128], index: 2, kind: input, shape index: {}]   ;;  %s537_s3 = inlined_call_operand.hbm [shape: f32[8,128], index: 3, kind: output, shape index: {0}]   ;;  %s538_s4 = inlined_call_operand.vmem [shape: s32[8,1], index: 4, kind: output, shape index: {1}]  }
   0x1   :  { %11 = vsyncpa [#allocation6], 0  ;;  %s28_s17 = sshll.u32 %s535_s1, 4  ;;  %s29_s17 = int_to_ptr.hbm [resolvable:$true] %s28_s17 }
   0x2   :  { %12 = vsyncpa [#allocation4], 0  ;;  %s488_s18 = smov [#allocation5]   ;;  %s18_s22 = sshll.u32 %s534_s0, 4  ;;  %s19_s22 = int_to_ptr.hbm [resolvable:$true] %s18_s22 }
   0x3   :  { %s30_s19 = sshll.u32 %s488_s18, 4  ;;  %s489_s23 = smov 64   ;;  %s31_s19 = int_to_ptr.vmem [resolvable:$true] %s30_s19 }
   0x4   :  { %s490_s24 = smov 4   ;;  %s491_s25 = smov [#allocation2]  }
   0x5   :  { %36 = dma.hbm_to_vmem [thread:$0]  %s29_s17, 2112, %s31_s19, [#allocation6], %s489_s23, %s489_s23, %s490_s24  }
   0x6   :  { %s20_s26 = sshll.u32 %s491_s25, 4  ;;  %s42_s29 = sshll.u32 %s536_s2, 4  ;;  %s21_s26 = int_to_ptr.vmem [resolvable:$true] %s20_s26  ;;  %s43_s29 = int_to_ptr.hbm [resolvable:$true] %s42_s29 }
   0x7   :  { %23 = dma.hbm_to_vmem [thread:$0]  %s19_s22, 128, %s21_s26, [#allocation3]  }
   0x8   :  { %s492_s1 = smov [#allocation7]  }
   0x9   :  { %s44_s30 = sshll.u32 %s492_s1, 4  ;;  %s45_s30 = int_to_ptr.vmem [resolvable:$true] %s44_s30 }
   0xa   :  { %47 = dma.hbm_to_vmem [thread:$0]  %s43_s29, 128, %s45_s30, [#allocation6]  }
   0xb   :  { %482 = dma.done.wait [#allocation3], 128  }
   0xc   :  { %483 = vsyncadd [#allocation3], 4294967168 }
   0xd   :  { %484 = dma.done.wait [#allocation6], 2240  }
   0xe   :  { %485 = vsyncadd [#allocation6], 4294965056  ;;  %vm104_vm0 = vcmask 1043456   ;;  %v63_v0 = vld [vmem:[#allocation5] sm:$0xf]  ;;  %v61_v1 = vld [vmem:[#allocation2] sm:$0xff]  ;;  %v250_v32 = vlaneseq }
   0xf   :  { %v368_v2 = vld [vmem:[#allocation5 + $0x3c] sm:$0xff]  ;;  %v106_v3 = vsel %vm104_vm0, %v63_v0, 0  ;;  %v62_v4 = vpack.c.bf16 %v61_v1, %v61_v1  ;;  %vm100_vm1 = vcmask 64512   ;;  %v367_v5 = vld [vmem:[#allocation5 + $0x34] sm:$0xff]  ;;  %v366_v6 = vld [vmem:[#allocation5 + $0x2c] sm:$0xff]  ;;  %s493_s0 = smov [#allocation8]  }
  0x10   :  { %115 = vmatpush.bf16.msra.mxu0 %v106_v3  ;;  %172 = vmatpush.bf16.msra.mxu1 %v368_v2  ;;  %v365_v7 = vld [vmem:[#allocation5 + $0x24] sm:$0xff]  ;;  %v364_v8 = vld [vmem:[#allocation5 + $0x1c] sm:$0xff]  ;;  %v363_v9 = vld [vmem:[#allocation5 + $0x14] sm:$0xff]  ;;  %v251_v33 = vand.u32 127, %v250_v32  ;;  %s279_s2 = sshll.u32 %s493_s0, 4  ;;  %s281_s7 = sshll.u32 %s537_s3, 4  ;;  %s280_s2 = int_to_ptr.vmem [resolvable:$true] %s279_s2  ;;  %s282_s7 = int_to_ptr.hbm [resolvable:$true] %s281_s7 }
  0x11   :  { %v362_v10 = vld [vmem:[#allocation5 + $0xc] sm:$0xff]  ;;  %v361_v11 = vld [vmem:[#allocation5 + $0x4] sm:$0xff]  ;;  %v376_v12 = vld [vmem:[#allocation5 + $0x7c] sm:$0xff]  ;;  %vm272_vm5 = vcmask 7168  }
  0x12   :  { %236 = vmatpush.bf16.msra.mxu2 %v376_v12  ;;  %v375_v13 = vld [vmem:[#allocation5 + $0x74] sm:$0xff]  ;;  %v374_v14 = vld [vmem:[#allocation5 + $0x6c] sm:$0xff]  ;;  %v373_v15 = vld [vmem:[#allocation5 + $0x64] sm:$0xff]  ;;  %vm252_vm2 = vcmp.lt.s32.totalorder %v251_v33, 5 }
  0x13   :  { %296 = vmatmul.msk.bf16.vlgmr.msra.gmra.mxu0 %vm100_vm1, %v62_v4  ;;  %v372_v16 = vld [vmem:[#allocation5 + $0x5c] sm:$0xff]  ;;  %v371_v17 = vld [vmem:[#allocation5 + $0x54] sm:$0xff]  ;;  %v383_v18 = vld [vmem:[#allocation7] ss:$0 sm:$0xff] }
  0x14   :  { %173 = vmatpush.bf16.msra.mxu1 %v367_v5  ;;  %v370_v24 = vld [vmem:[#allocation5 + $0x4c] sm:$0xff]  ;;  %v369_v25 = vld [vmem:[#allocation5 + $0x44] sm:$0xff] }
  0x15   :  { %v384_v26 = vld [vmem:[#allocation7 + $0x1] ss:$0 sm:$0xff]  ;;  %v385_v34 = vld [vmem:[#allocation7 + $0x2] ss:$0 sm:$0xff] }
  0x16   :  { %237 = vmatpush.bf16.msra.mxu2 %v375_v13 }
  0x18   :  { %174 = vmatpush.bf16.msra.mxu1 %v366_v6 }
  0x1a   :  { %238 = vmatpush.bf16.msra.mxu2 %v374_v14 }
  0x1c   :  { %175 = vmatpush.bf16.msra.mxu1 %v365_v7 }
  0x1e   :  { %239 = vmatpush.bf16.msra.mxu2 %v373_v15 }
  0x20   :  { %176 = vmatpush.bf16.msra.mxu1 %v364_v8 }
  0x22   :  { %240 = vmatpush.bf16.msra.mxu2 %v372_v16 }
  0x24   :  { %177 = vmatpush.bf16.msra.mxu1 %v363_v9 }
  0x26   :  { %241 = vmatpush.bf16.msra.mxu2 %v371_v17 }
  0x28   :  { %178 = vmatpush.bf16.msra.mxu1 %v362_v10 }
  0x2a   :  { %242 = vmatpush.bf16.msra.mxu2 %v370_v24 }
  0x2c   :  { %179 = vmatpush.bf16.msra.mxu1 %v361_v11 }
  0x2e   :  { %243 = vmatpush.bf16.msra.mxu2 %v369_v25 }
  0x90   :  { %v117_v19 = vpop.f32.mrf.mxu0 }
  0x91   :  { %v118_v20 = vadd.f32 %v383_v18, %v117_v19 }
  0x93   :  { %v121_v21 = vmax.f32 %v118_v20, 0.0 }
  0x95   :  { %v122_v22 = vpack.c.bf16 %v121_v21, %v121_v21 }
  0x97   :  { %180 = vmatmul.bf16.vlgmr.msra.gmra.mxu1 %v122_v22 }
  0x98   :  { %v119_v23 = vpop.f32.mrf.mxu0 }
 0x114   :  { %v181_v27 = vpop.f32.mrf.mxu1 }
 0x115   :  { %v182_v28 = vadd.f32 %v384_v26, %v181_v27 }
 0x117   :  { %v185_v29 = vmax.f32 %v182_v28, 0.0 }
 0x119   :  { %v186_v30 = vpack.c.bf16 %v185_v29, %v185_v29 }
 0x11b   :  { %244 = vmatmul.bf16.vlgmr.msra.gmra.mxu2 %v186_v30 }
 0x11c   :  { %v183_v31 = vpop.f32.mrf.mxu1 }
 0x19e   :  { %v245_v35 = vpop.f32.mrf.mxu2 }
 0x19f   :  { %v246_v36 = vadd.f32 %v385_v34, %v245_v35 }
 0x1a1   :  { %249 = vst [vmem:[#allocation8] sm:$0xff] %v246_v36  ;;  %v253_v37 = vsel %vm252_vm2, %v246_v36, -inf }
 0x1a2   :  { %254 = vmax.xlane.f32.xlu0 %v253_v37  ;;  %284 = dma.vmem_to_hbm [thread:$0]  %s280_s2, 128, %s282_s7, [#allocation4]  }
 0x1a6   :  { %v247_v38 = vpop.f32.mrf.mxu2 }
 0x215   :  { %v255_v39 = vpop.xlane.xlu0 %254 }
 0x216   :  { %vm256_vm3 = vcmp.eq.f32.partialorder %v253_v37, %v255_v39 }
 0x217   :  { %v257_v40 = vsel %vm256_vm3, %v251_v33, 128 }
 0x218   :  { %v259_v41 = vshra.s32 %v257_v40, 16  ;;  %v258_v43 = vand.u32 65535, %v257_v40 }
 0x21a   :  { %v261_v42 = vcvt.s32.f32 %v259_v41  ;;  %v260_v45 = vcvt.s32.f32 %v258_v43 }
 0x21c   :  { %262 = vmin.xlane.f32.xlu0 %v261_v42 }
 0x28f   :  { %v263_v44 = vpop.xlane.xlu0 %262 }
 0x290   :  { %vm264_vm4 = vcmp.eq.f32.partialorder %v261_v42, %v263_v44  ;;  %v269_v47 = vcvt.f32.s32 %v263_v44 }
 0x291   :  { %v265_v46 = vsel %vm264_vm4, %v260_v45, inf }
 0x292   :  { %266 = vmin.xlane.f32.xlu1 %v265_v46  ;;  %v270_v49 = vshll.u32 %v269_v47, 16 }
 0x305   :  { %v267_v48 = vpop.xlane.xlu1 %266 }
 0x306   :  { %v268_v50 = vcvt.f32.s32 %v267_v48 }
 0x308   :  { %v271_v51 = vadd.s32 %v270_v49, %v268_v50 }
 0x30a   :  { %273 = vst.msk [vmem:[%s538_s4] sm:$0xff] %vm272_vm5, %v271_v51 }
 0x30b   :  { %486 = dma.done.wait [#allocation4], 128  }
 0x30c   :  { %487 = vsyncadd [#allocation4], 4294967168 }
 0x30d   :  { %293 = vsyncpa [#allocation3], 1 }
 0x30e   :  { %294 = vsyncpa [#allocation6], 1 }
 0x30f   :  { %295 = vsyncpa [#allocation4], 1 }

</bundles_post_ra>
